<compile_context>
chip_gen: v6e
topology: v6e:2x2x1
jax: 0.10.0
libtpu: 0.0.40
codegen_flags: <defaults>
</compile_context>

<pallas_src>
import jax
import jax.numpy as jnp
import numpy as np
from jax.experimental import pallas as pl
from jax.experimental.pallas import tpu as pltpu


def _normalize_kernel(scale_ref, bias_ref, x_ref, o_ref):
    # scale_ref / bias_ref: VMEM blocks of shape (block_rows, 1), f32.
    # x_ref / o_ref: VMEM blocks of shape (block_rows, L).
    x = x_ref[...].astype(jnp.float32)
    o_ref[...] = (x * scale_ref[...] + bias_ref[...]).astype(o_ref.dtype)


def _pick_block_rows(rows, lanes, itemsize, target_bytes=2 << 20):
    """Largest multiple-of-8 divisor of `rows` whose block fits ~target_bytes.

    Falls back to the full row count when rows is not a multiple of 8 (the
    (8, 128) layout rule is then satisfied by using the full array dim).
    """
    if rows % 8 != 0:
        return rows
    divisors = [br for br in range(8, rows + 1, 8) if rows % br == 0]
    fitting = [br for br in divisors if br * lanes * itemsize <= target_bytes]
    if fitting:
        # Prefer >1 grid step (megacore sharding on v7x) when possible.
        non_full = [br for br in fitting if br < rows]
        return max(non_full) if non_full else max(fitting)
    return min(divisors)


def normalize(x, mean, std):
    """x: (N, C, H, W) float array; mean/std: (C,) float arrays."""
    N, C, H, W = x.shape
    R = N * C          # rows after flattening
    L = H * W          # lane-dense spatial dimension

    # Precompute fused scale/bias in f32 (per-channel, tiled over the batch).
    scale_c = (1.0 / std.astype(jnp.float32))
    bias_c = (-mean.astype(jnp.float32) * scale_c)
    scale_rows = jnp.tile(scale_c, N).reshape(R, 1)
    bias_rows = jnp.tile(bias_c, N).reshape(R, 1)

    x2 = x.reshape(R, L)

    block_rows = _pick_block_rows(R, L, jnp.dtype(x.dtype).itemsize)
    grid = (R // block_rows,)

    y2 = pl.pallas_call(
        _normalize_kernel,
        out_shape=jax.ShapeDtypeStruct((R, L), x.dtype),
        grid_spec=pltpu.PrefetchScalarGridSpec(
            num_scalar_prefetch=0,
            grid=grid,
            in_specs=[
                pl.BlockSpec((block_rows, 1), lambda i: (i, 0)),
                pl.BlockSpec((block_rows, 1), lambda i: (i, 0)),
                pl.BlockSpec((block_rows, L), lambda i: (i, 0)),
            ],
            out_specs=pl.BlockSpec((block_rows, L), lambda i: (i, 0)),
        ),
        compiler_params=pltpu.CompilerParams(
            dimension_semantics=("parallel",),
            vmem_limit_bytes=32 * 1024 * 1024,
        ),
    )(scale_rows, bias_rows, x2)

    return y2.reshape(N, C, H, W)


if __name__ == "__main__":
    # Deterministic parameters from the module's __init__ (CIFAR-10 stats).
    mean = jnp.array([0.4914, 0.4822, 0.4465], dtype=jnp.float32)
    std = jnp.array([0.247, 0.243, 0.261], dtype=jnp.float32)

    # Small NCHW input: batch=2, channels=3 (fixed by mean/std), spatial=16.
    key = jax.random.PRNGKey(0)
    x = jax.random.uniform(key, (2, 3, 16, 16), dtype=jnp.float32)

    y = normalize(x, mean, std)
    y = jax.block_until_ready(y)

    # Reference check against plain-JAX semantics of the PyTorch forward.
    y_ref = (x - mean[None, :, None, None]) / std[None, :, None, None]
    np.testing.assert_allclose(np.asarray(y), np.asarray(y_ref),
                               rtol=1e-5, atol=1e-5)

    print("KERNEL_OK")
</pallas_src>

<mosaic_0001>
module attributes {stable_mosaic.version = 11 : i64} {
  func.func @_normalize_kernel(%arg0: i32, %arg1: memref<6x1xf32, #tpu.memory_space<vmem>>, %arg2: memref<6x1xf32, #tpu.memory_space<vmem>>, %arg3: memref<6x256xf32, #tpu.memory_space<vmem>>, %arg4: memref<6x256xf32, #tpu.memory_space<vmem>>) attributes {dimension_semantics = [#tpu.dimension_semantics<parallel>], iteration_bounds = array<i64: 1>, scalar_prefetch = 0 : i64, scratch_operands = 0 : i64, tpu.core_type = #tpu.core_type<tc>, window_params = [{transform_indices = @transform_0, window_bounds = array<i64: 6, 1>}, {transform_indices = @transform_1, window_bounds = array<i64: 6, 1>}, {transform_indices = @transform_2, window_bounds = array<i64: 6, 256>}, {transform_indices = @transform_3, window_bounds = array<i64: 6, 256>}]} {
    %c0 = arith.constant 0 : index
    %c0_0 = arith.constant 0 : index
    %0 = vector.load %arg3[%c0, %c0_0] : memref<6x256xf32, #tpu.memory_space<vmem>>, vector<6x256xf32>
    %c0_1 = arith.constant 0 : index
    %c0_2 = arith.constant 0 : index
    %1 = vector.load %arg1[%c0_1, %c0_2] : memref<6x1xf32, #tpu.memory_space<vmem>>, vector<6x1xf32>
    %2 = vector.broadcast %1 : vector<6x1xf32> to vector<6x256xf32>
    %3 = arith.mulf %0, %2 : vector<6x256xf32>
    %c0_3 = arith.constant 0 : index
    %c0_4 = arith.constant 0 : index
    %4 = vector.load %arg2[%c0_3, %c0_4] : memref<6x1xf32, #tpu.memory_space<vmem>>, vector<6x1xf32>
    %5 = vector.broadcast %4 : vector<6x1xf32> to vector<6x256xf32>
    %6 = arith.addf %3, %5 : vector<6x256xf32>
    %c0_5 = arith.constant 0 : index
    %c0_6 = arith.constant 0 : index
    %7 = vector.load %arg4[%c0_5, %c0_6] : memref<6x256xf32, #tpu.memory_space<vmem>>, vector<6x256xf32>
    tpu.vector_store %arg4[%c0_5, %c0_6], %6 {strides = array<i32>} : memref<6x256xf32, #tpu.memory_space<vmem>>, vector<6x256xf32>,
    return
  }
  func.func @transform_0(%arg0: i32) -> (i32, i32) {
    %c0_i32 = arith.constant 0 : i32
    %c0_i32_0 = arith.constant 0 : i32
    return %arg0, %c0_i32 : i32, i32
  }
  func.func @transform_1(%arg0: i32) -> (i32, i32) {
    %c0_i32 = arith.constant 0 : i32
    %c0_i32_0 = arith.constant 0 : i32
    return %arg0, %c0_i32 : i32, i32
  }
  func.func @transform_2(%arg0: i32) -> (i32, i32) {
    %c0_i32 = arith.constant 0 : i32
    %c0_i32_0 = arith.constant 0 : i32
    return %arg0, %c0_i32 : i32, i32
  }
  func.func @transform_3(%arg0: i32) -> (i32, i32) {
    %c0_i32 = arith.constant 0 : i32
    %c0_i32_0 = arith.constant 0 : i32
    return %arg0, %c0_i32 : i32, i32
  }
}

</mosaic_0001>

<bundles_post_ra>
// kernel: tpu_custom_call.1
= control target key start
LH: loop header
LB: loop body
LE: loop exit
PB: predicated region body
PF: predicated region fallthrough
CT: control target
= control target key end

     0   :  { %v74_v1 = vmov 0   ;;  %s111_s0 = inlined_call_operand.vmem [shape: f32[6,1], index: 0, kind: input, shape index: {}]   ;;  %s112_s1 = inlined_call_operand.vmem [shape: f32[6,1], index: 1, kind: input, shape index: {}]   ;;  %s113_s2 = inlined_call_operand.vmem [shape: f32[6,256], index: 2, kind: input, shape index: {}]   ;;  %s114_s3 = inlined_call_operand.hbm [shape: f32[6,256], index: 3, kind: output, shape index: {}]  }
   0x1   :  { %v17_v0 = vld [vmem:[%s111_s0] sm:$0x3f]  ;;  %51 = vset.pattern.permute.xlu0 %v74_v1 }
   0x2   :  { %8 = vsyncpa [#allocation3], 0  ;;  %20 = vperm.xlu0 %51, %v17_v0   ;;  %v25_v2 = vld [vmem:[%s112_s1] sm:$0x3f]  ;;  %v16_v5 = vld [vmem:[%s113_s2 + $0x8] sm:$0x3f] }
   0x3   :  { %v15_v4 = vld [vmem:[%s113_s2] sm:$0x3f]  ;;  %s75_s20 = smov [#allocation2]  }
   0x4   :  { %s41_s0 = sshll.u32 %s75_s20, 4  ;;  %s42_s0 = int_to_ptr.vmem [resolvable:$true] %s41_s0 }
   0x5   :  { %s52_s1 = scalar_lea.vmem %s42_s0, 256  ;;  %p57_p1 = scmp.lt.s32.totalorder %s42_s0, %s42_s0 }
   0x6   :  { %28 = vperm.xlu0 %51, %v25_v2   ;;  %p53_p0 = scmp.ne.s32.totalorder %s42_s0, %s52_s1  ;;  %p58_p2 = scmp.lt.s32.totalorder %s52_s1, %s52_s1 }
   0x8   :  { %p59_p3 = por %p58_p2, %p57_p1 }
   0xa   :  { %p60_p4 = pnand %p59_p3, %p53_p0 }
  0x7d   :  { %v21_v3 = vpop.permute.xlu0 %20 }
  0x7e   :  { %v23_v6 = vmul.f32 %v21_v3, %v15_v4  ;;  %v24_v7 = vmul.f32 %v21_v3, %v16_v5 }
  0x81   :  { %v29_v8 = vpop.permute.xlu0 %28 }
  0x82   :  { %v31_v9 = vadd.f32 %v29_v8, %v23_v6  ;;  %v32_v10 = vadd.f32 %v29_v8, %v24_v7 }
  0x84   :  { %33 = vst [vmem:[#allocation2] sm:$0x3f] %v31_v9  ;;  %34 = vst [vmem:[#allocation2 + $0x8] sm:$0x3f] %v32_v10 }
  0x85   :  { %63 = shalt.err (!%p60_p4)
}
  0x86   :  { %44 = dma.vmem_to_hbm [thread:$0]  %s42_s0, 256, %s114_s3, [#allocation3]  }
  0x87   :  { %72 = dma.done.wait [#allocation3], 256  }
  0x88   :  { %73 = vsyncadd [#allocation3], 4294967040 }
  0x89   :  { %48 = vsyncpa [#allocation3], 1 }

</bundles_post_ra>
